<compile_context>
chip_gen: v6e
topology: v6e:2x2x1
jax: 0.10.0
libtpu: 0.0.40
codegen_flags: <defaults>
</compile_context>

<pallas_src>
import jax
import jax.numpy as jnp
from jax.experimental import pallas as pl
from jax.experimental.pallas import tpu as pltpu  # noqa: F401  (TPU backend)

# ----------------------------- config (small) -------------------------------
B = 2                    # batch
T = 16                   # time steps
NO_FILTERS = 128         # config.no_filters   (lane-dense: multiple of 128)
DIM = 256                # config.dimension    (lane-dense: multiple of 128)
LN_EPS = 1e-5            # config.layer_norm_eps
BT = B * T               # rows processed in one block


# ------------------------------ Pallas kernel -------------------------------
def feature_projection_kernel(x_ref, g_ref, beta_ref, w_ref, pb_ref, out_ref):
    """Fused LayerNorm(no_filters) + Linear(no_filters -> dimension).

    x_ref    : (BT, NO_FILTERS)   flattened activations
    g_ref    : (1, NO_FILTERS)    LayerNorm gamma
    beta_ref : (1, NO_FILTERS)    LayerNorm beta
    w_ref    : (NO_FILTERS, DIM)  projection weight (already transposed)
    pb_ref   : (1, DIM)           projection bias
    out_ref  : (BT, DIM)
    """
    x = x_ref[...]                                        # (BT, NF) f32

    # --- LayerNorm over the feature (lane) axis ---
    inv_n = 1.0 / NO_FILTERS
    mean = jnp.sum(x, axis=-1, keepdims=True) * inv_n
    xc = x - mean
    var = jnp.sum(xc * xc, axis=-1, keepdims=True) * inv_n
    xn = xc * jax.lax.rsqrt(var + LN_EPS)                 # rsqrt -> EUP slot
    y = xn * g_ref[0] + beta_ref[0]                       # affine

    # --- Linear projection: single lane-dense MXU matmul, f32 accumulate ---
    out_ref[...] = (
        jnp.dot(y, w_ref[...], preferred_element_type=jnp.float32) + pb_ref[0]
    )
    # TODO(synk): Dropout is identity at inference time (no RNG / train path).


# ------------------------------ host wrapper --------------------------------
def feature_projection(x, ln_g, ln_b, w, b):
    """x: (B, T, NO_FILTERS) -> (B, T, DIM)."""
    x2 = x.reshape(BT, NO_FILTERS)

    flops = 2 * BT * NO_FILTERS * DIM + 8 * BT * NO_FILTERS
    bytes_accessed = 4 * (x2.size + ln_g.size + ln_b.size + w.size + b.size
                          + BT * DIM)

    out = pl.pallas_call(
        feature_projection_kernel,
        out_shape=jax.ShapeDtypeStruct((BT, DIM), jnp.float32),
        # single invocation (no grid): full-array blocks, everything in VMEM
        in_specs=[
            pl.BlockSpec((BT, NO_FILTERS), lambda: (0, 0)),
            pl.BlockSpec((1, NO_FILTERS), lambda: (0, 0)),
            pl.BlockSpec((1, NO_FILTERS), lambda: (0, 0)),
            pl.BlockSpec((NO_FILTERS, DIM), lambda: (0, 0)),
            pl.BlockSpec((1, DIM), lambda: (0, 0)),
        ],
        out_specs=pl.BlockSpec((BT, DIM), lambda: (0, 0)),
        cost_estimate=pl.CostEstimate(
            flops=flops, transcendentals=BT, bytes_accessed=bytes_accessed),
    )(x2, ln_g, ln_b, w, b)

    return out.reshape(B, T, DIM)


# --------------------------- pure-JAX reference ------------------------------
def reference_forward(x, ln_g, ln_b, w, b):
    hi = jax.lax.Precision.HIGHEST
    m = jnp.mean(x, axis=-1, keepdims=True)
    v = jnp.mean((x - m) ** 2, axis=-1, keepdims=True)
    y = (x - m) * jax.lax.rsqrt(v + LN_EPS) * ln_g[0] + ln_b[0]
    return jnp.einsum('btf,fd->btd', y, w, precision=hi) + b[0]


# ----------------------------------- main ------------------------------------
if __name__ == "__main__":
    key = jax.random.PRNGKey(0)
    kx, kg, kbeta, kw, kb = jax.random.split(key, 5)

    x = jax.random.normal(kx, (B, T, NO_FILTERS), jnp.float32)
    ln_g = 1.0 + 0.1 * jax.random.normal(kg, (1, NO_FILTERS), jnp.float32)
    ln_b = 0.1 * jax.random.normal(kbeta, (1, NO_FILTERS), jnp.float32)
    # PyTorch Linear stores (out, in); keep it pre-transposed as (in, out).
    w = jax.random.normal(kw, (NO_FILTERS, DIM), jnp.float32) * 0.05
    b = jax.random.normal(kb, (1, DIM), jnp.float32) * 0.05

    out = feature_projection(x, ln_g, ln_b, w, b)
    out = jax.block_until_ready(out)

    ref = reference_forward(x, ln_g, ln_b, w, b)
    max_diff = float(jnp.max(jnp.abs(out - ref)))
    assert out.shape == (B, T, DIM), out.shape
    assert max_diff < 1e-3, f"mismatch vs reference: {max_diff}"

    print("KERNEL_OK")
</pallas_src>

<mosaic_0001>
module attributes {stable_mosaic.version = 11 : i64} {
  func.func @feature_projection_kernel(%arg0: memref<32x128xf32, #tpu.memory_space<vmem>>, %arg1: memref<1x128xf32, #tpu.memory_space<vmem>>, %arg2: memref<1x128xf32, #tpu.memory_space<vmem>>, %arg3: memref<128x256xf32, #tpu.memory_space<vmem>>, %arg4: memref<1x256xf32, #tpu.memory_space<vmem>>, %arg5: memref<32x256xf32, #tpu.memory_space<vmem>>) attributes {dimension_semantics = [], scalar_prefetch = 0 : i64, scratch_operands = 0 : i64, tpu.core_type = #tpu.core_type<tc>} {
    %c0 = arith.constant 0 : index
    %c0_0 = arith.constant 0 : index
    %0 = vector.load %arg0[%c0, %c0_0] : memref<32x128xf32, #tpu.memory_space<vmem>>, vector<32x128xf32>
    %cst = arith.constant dense<0.000000e+00> : vector<32xf32>
    %1 = vector.multi_reduction <add>, %0, %cst [1] : vector<32x128xf32> to vector<32xf32>
    %2 = vector.shape_cast %1 : vector<32xf32> to vector<32x1xf32>
    %cst_1 = arith.constant 7.812500e-03 : f32
    %3 = vector.broadcast %cst_1 : f32 to vector<32x1xf32>
    %4 = arith.mulf %2, %3 : vector<32x1xf32>
    %5 = vector.broadcast %4 : vector<32x1xf32> to vector<32x128xf32>
    %6 = arith.subf %0, %5 : vector<32x128xf32>
    %7 = arith.mulf %6, %6 : vector<32x128xf32>
    %cst_2 = arith.constant dense<0.000000e+00> : vector<32xf32>
    %8 = vector.multi_reduction <add>, %7, %cst_2 [1] : vector<32x128xf32> to vector<32xf32>
    %9 = vector.shape_cast %8 : vector<32xf32> to vector<32x1xf32>
    %cst_3 = arith.constant 7.812500e-03 : f32
    %10 = vector.broadcast %cst_3 : f32 to vector<32x1xf32>
    %11 = arith.mulf %9, %10 : vector<32x1xf32>
    %cst_4 = arith.constant 9.99999974E-6 : f32
    %12 = vector.broadcast %cst_4 : f32 to vector<32x1xf32>
    %13 = arith.addf %11, %12 : vector<32x1xf32>
    %14 = math.rsqrt %13 : vector<32x1xf32>
    %15 = vector.broadcast %14 : vector<32x1xf32> to vector<32x128xf32>
    %16 = arith.mulf %6, %15 : vector<32x128xf32>
    %c0_5 = arith.constant 0 : index
    %c0_6 = arith.constant 0 : index
    %17 = vector.load %arg1[%c0_5, %c0_6] : memref<1x128xf32, #tpu.memory_space<vmem>>, vector<1x128xf32>
    %18 = vector.shape_cast %17 : vector<1x128xf32> to vector<128xf32>
    %19 = vector.shape_cast %18 : vector<128xf32> to vector<1x128xf32>
    %20 = vector.broadcast %19 : vector<1x128xf32> to vector<32x128xf32>
    %21 = arith.mulf %16, %20 : vector<32x128xf32>
    %c0_7 = arith.constant 0 : index
    %c0_8 = arith.constant 0 : index
    %22 = vector.load %arg2[%c0_7, %c0_8] : memref<1x128xf32, #tpu.memory_space<vmem>>, vector<1x128xf32>
    %23 = vector.shape_cast %22 : vector<1x128xf32> to vector<128xf32>
    %24 = vector.shape_cast %23 : vector<128xf32> to vector<1x128xf32>
    %25 = vector.broadcast %24 : vector<1x128xf32> to vector<32x128xf32>
    %26 = arith.addf %21, %25 : vector<32x128xf32>
    %c0_9 = arith.constant 0 : index
    %c0_10 = arith.constant 0 : index
    %27 = vector.load %arg3[%c0_9, %c0_10] : memref<128x256xf32, #tpu.memory_space<vmem>>, vector<128x256xf32>
    %cst_11 = arith.constant dense<0.000000e+00> : vector<32x256xf32>
    %28 = tpu.matmul %26, %27, %cst_11 {dimension_numbers = #tpu.dot_dimension_numbers<[1], [0], [0], [1], [0, 0, 1, 1], [], []>} : vector<32x128xf32>, vector<128x256xf32>, vector<32x256xf32> -> vector<32x256xf32>
    %c0_12 = arith.constant 0 : index
    %c0_13 = arith.constant 0 : index
    %29 = vector.load %arg4[%c0_12, %c0_13] : memref<1x256xf32, #tpu.memory_space<vmem>>, vector<1x256xf32>
    %30 = vector.shape_cast %29 : vector<1x256xf32> to vector<256xf32>
    %31 = vector.shape_cast %30 : vector<256xf32> to vector<1x256xf32>
    %32 = vector.broadcast %31 : vector<1x256xf32> to vector<32x256xf32>
    %33 = arith.addf %28, %32 : vector<32x256xf32>
    %c0_14 = arith.constant 0 : index
    %c0_15 = arith.constant 0 : index
    %34 = vector.load %arg5[%c0_14, %c0_15] : memref<32x256xf32, #tpu.memory_space<vmem>>, vector<32x256xf32>
    tpu.vector_store %arg5[%c0_14, %c0_15], %33 {strides = array<i32>} : memref<32x256xf32, #tpu.memory_space<vmem>>, vector<32x256xf32>,
    return
  }
}

</mosaic_0001>

<bundles_post_ra>
// kernel: tpu_custom_call.1
= control target key start
LH: loop header
LB: loop body
LE: loop exit
PB: predicated region body
PF: predicated region fallthrough
CT: control target
= control target key end

     0   :  { %10 = vsyncpa [#allocation3], 0  ;;  %s509_s0 = inlined_call_operand.hbm [shape: f32[32,128], index: 0, kind: input, shape index: {}]   ;;  %s510_s1 = inlined_call_operand.vmem [shape: f32[1,128], index: 1, kind: input, shape index: {}]   ;;  %s511_s2 = inlined_call_operand.hbm [shape: f32[1,128], index: 2, kind: input, shape index: {}]   ;;  %s512_s3 = inlined_call_operand.hbm [shape: f32[128,256], index: 3, kind: input, shape index: {}]   ;;  %s513_s4 = inlined_call_operand.vmem [shape: f32[1,256], index: 4, kind: input, shape index: {}]   ;;  %s514_s5 = inlined_call_operand.hbm [shape: f32[32,256], index: 5, kind: output, shape index: {}]  }
   0x1   :  { %11 = vsyncpa [#allocation6], 0 }
   0x2   :  { %12 = vsyncpa [#allocation4], 0  ;;  %s426_s18 = smov [#allocation5]   ;;  %s427_s20 = smov [#allocation2]  }
   0x3   :  { %s33_s19 = sshll.u32 %s426_s18, 4  ;;  %s18_s21 = sshll.u32 %s427_s20, 4  ;;  %s34_s19 = int_to_ptr.vmem [resolvable:$true] %s33_s19  ;;  %s19_s21 = int_to_ptr.vmem [resolvable:$true] %s18_s21 }
   0x4   :  { %s348_s22 = scalar_lea.vmem %s34_s19, 16  ;;  %s352_s23 = scalar_lea.vmem %s34_s19, 32 }
   0x5   :  { %p349_p0 = scmp.ne.s32.totalorder %s34_s19, %s348_s22  ;;  %p353_p1 = scmp.lt.s32.totalorder %s34_s19, %s34_s19 }
   0x6   :  { %p354_p2 = scmp.lt.s32.totalorder %s352_s23, %s348_s22 }
   0x8   :  { %p355_p3 = por %p354_p2, %p353_p1 }
   0xa   :  { %p356_p4 = pnand %p355_p3, %p349_p0 }
   0xc   :  { %359 = shalt.err (!%p356_p4)
}
   0xd   :  { %36 = dma.hbm_to_vmem [thread:$0]  %s511_s2, 16, %s34_s19, [#allocation6]  }
   0xe   :  { %s368_s26 = scalar_lea.vmem %s19_s21, 512  ;;  %p373_p6 = scmp.lt.s32.totalorder %s19_s21, %s19_s21 }
   0xf   :  { %p369_p5 = scmp.ne.s32.totalorder %s19_s21, %s368_s26  ;;  %p374_p7 = scmp.lt.s32.totalorder %s368_s26, %s368_s26 }
  0x11   :  { %p375_p8 = por %p374_p7, %p373_p6 }
  0x13   :  { %p376_p9 = pnand %p375_p8, %p369_p5 }
  0x15   :  { %379 = shalt.err (!%p376_p9)
}
  0x16   :  { %s428_s27 = smov 128   ;;  %s429_s28 = smov 8  }
  0x17   :  { %24 = dma.hbm_to_vmem [thread:$0]  %s509_s0, 512, %s19_s21, [#allocation3], %s428_s27, %s428_s27, %s429_s28  }
  0x18   :  { %s430_s6 = smov [#allocation7]  }
  0x19   :  { %s42_s7 = sshll.u32 %s430_s6, 4  ;;  %s43_s7 = int_to_ptr.vmem [resolvable:$true] %s42_s7 }
  0x1a   :  { %s388_s8 = scalar_lea.vmem %s43_s7, 4096  ;;  %p393_p11 = scmp.lt.s32.totalorder %s43_s7, %s43_s7 }
  0x1b   :  { %p389_p10 = scmp.ne.s32.totalorder %s43_s7, %s388_s8  ;;  %p394_p12 = scmp.lt.s32.totalorder %s388_s8, %s388_s8 }
  0x1d   :  { %p395_p13 = por %p394_p12, %p393_p11 }
  0x1f   :  { %p396_p0 = pnand %p395_p13, %p389_p10 }
  0x21   :  { %399 = shalt.err (!%p396_p0)
}
  0x22   :  { %s431_s2 = smov 256   ;;  %s432_s9 = smov 16  }
  0x23   :  { %48 = dma.hbm_to_vmem [thread:$0]  %s512_s3, 4096, %s43_s7, [#allocation6], %s431_s2, %s431_s2, %s432_s9  }
  0x24   :  { %420 = dma.done.wait [#allocation3], 512  }
  0x25   :  { %421 = vsyncadd [#allocation3], 4294966784 }
  0x26   :  { %422 = dma.done.wait [#allocation6], 4112  }
  0x27   :  { %423 = vsyncadd [#allocation6], 4294963184  ;;  %v60_v0 = vld [vmem:[#allocation2] sm:$0xff]  ;;  %v61_v1 = vld [vmem:[#allocation2 + $0x8] sm:$0xff]  ;;  %v433_v52 = vmov 0.0  }
  0x28   :  { %64 = vadd.xlane.f32.xlu0 %v60_v0  ;;  %66 = vadd.xlane.f32.xlu1 %v61_v1  ;;  %v62_v2 = vld [vmem:[#allocation2 + $0x10] sm:$0xff]  ;;  %v63_v3 = vld [vmem:[#allocation2 + $0x18] sm:$0xff]  ;;  %v158_v7 = vld [vmem:[#allocation7 + $0xe0] sm:$0xff] }
  0x29   :  { %v161_v4 = vld [vmem:[#allocation7 + $0xf8] sm:$0xff]  ;;  %v160_v5 = vld [vmem:[#allocation7 + $0xf0] sm:$0xff]  ;;  %v159_v6 = vld [vmem:[#allocation7 + $0xe8] sm:$0xff]  ;;  %238 = vmatprep.mubr.f32.mxu0 %v433_v52  ;;  %250 = vmatprep.mubr.f32.mxu1 %v433_v52 }
  0x2a   :  { %174 = vmatprep.subr.mxu0 %v161_v4  ;;  %291 = vmatprep.subr.mxu1 %v161_v4  ;;  %v157_v8 = vld [vmem:[#allocation7 + $0xd8] sm:$0xff]  ;;  %v156_v9 = vld [vmem:[#allocation7 + $0xd0] sm:$0xff]  ;;  %v155_v10 = vld [vmem:[#allocation7 + $0xc8] sm:$0xff] }
  0x2b   :  { %175 = vmatpush1.msra.mxu0 %v160_v5  ;;  %307 = vmatpush1.msra.mxu1 %v160_v5  ;;  %v154_v11 = vld [vmem:[#allocation7 + $0xc0] sm:$0xff]  ;;  %v153_v28 = vld [vmem:[#allocation7 + $0xb8] sm:$0xff]  ;;  %v152_v29 = vld [vmem:[#allocation7 + $0xb0] sm:$0xff] }
  0x2c   :  { %68 = vadd.xlane.f32.xlu0 %v62_v2  ;;  %70 = vadd.xlane.f32.xlu1 %v63_v3  ;;  %v151_v30 = vld [vmem:[#allocation7 + $0xa8] sm:$0xff]  ;;  %v150_v31 = vld [vmem:[#allocation7 + $0xa0] sm:$0xff]  ;;  %v149_v32 = vld [vmem:[#allocation7 + $0x98] sm:$0xff] }
  0x2d   :  { %176 = vmatprep.subr.mxu0 %v159_v6  ;;  %292 = vmatprep.subr.mxu1 %v159_v6  ;;  %v148_v33 = vld [vmem:[#allocation7 + $0x90] sm:$0xff]  ;;  %v147_v34 = vld [vmem:[#allocation7 + $0x88] sm:$0xff]  ;;  %v146_v35 = vld [vmem:[#allocation7 + $0x80] sm:$0xff] }
  0x2e   :  { %177 = vmatpush1.msra.mxu0 %v158_v7  ;;  %308 = vmatpush1.msra.mxu1 %v158_v7  ;;  %v145_v36 = vld [vmem:[#allocation7 + $0x78] sm:$0xff]  ;;  %v144_v37 = vld [vmem:[#allocation7 + $0x70] sm:$0xff]  ;;  %v143_v38 = vld [vmem:[#allocation7 + $0x68] sm:$0xff] }
  0x2f   :  { %178 = vmatprep.subr.mxu0 %v157_v8  ;;  %293 = vmatprep.subr.mxu1 %v157_v8  ;;  %v142_v39 = vld [vmem:[#allocation7 + $0x60] sm:$0xff]  ;;  %v141_v40 = vld [vmem:[#allocation7 + $0x58] sm:$0xff]  ;;  %v140_v41 = vld [vmem:[#allocation7 + $0x50] sm:$0xff] }
  0x30   :  { %179 = vmatpush1.msra.mxu0 %v156_v9  ;;  %309 = vmatpush1.msra.mxu1 %v156_v9  ;;  %v139_v42 = vld [vmem:[#allocation7 + $0x48] sm:$0xff]  ;;  %v138_v43 = vld [vmem:[#allocation7 + $0x40] sm:$0xff]  ;;  %v137_v44 = vld [vmem:[#allocation7 + $0x38] sm:$0xff] }
  0x31   :  { %180 = vmatprep.subr.mxu0 %v155_v10  ;;  %294 = vmatprep.subr.mxu1 %v155_v10  ;;  %v136_v45 = vld [vmem:[#allocation7 + $0x30] sm:$0xff]  ;;  %v135_v46 = vld [vmem:[#allocation7 + $0x28] sm:$0xff]  ;;  %v134_v47 = vld [vmem:[#allocation7 + $0x20] sm:$0xff] }
  0x32   :  { %181 = vmatpush1.msra.mxu0 %v154_v11  ;;  %310 = vmatpush1.msra.mxu1 %v154_v11  ;;  %v133_v48 = vld [vmem:[#allocation7 + $0x18] sm:$0xff]  ;;  %v132_v49 = vld [vmem:[#allocation7 + $0x10] sm:$0xff]  ;;  %v131_v50 = vld [vmem:[#allocation7 + $0x8] sm:$0xff] }
  0x33   :  { %182 = vmatprep.subr.mxu0 %v153_v28  ;;  %295 = vmatprep.subr.mxu1 %v153_v28  ;;  %v130_v51 = vld [vmem:[#allocation7] sm:$0xff]  ;;  %v290_v4 = vld [vmem:[#allocation5] ss:$0 sm:$0xff] }
  0x34   :  { %183 = vmatpush1.msra.mxu0 %v152_v29  ;;  %311 = vmatpush1.msra.mxu1 %v152_v29 }
  0x35   :  { %184 = vmatprep.subr.mxu0 %v151_v30  ;;  %296 = vmatprep.subr.mxu1 %v151_v30 }
  0x36   :  { %185 = vmatpush1.msra.mxu0 %v150_v31  ;;  %312 = vmatpush1.msra.mxu1 %v150_v31 }
  0x37   :  { %186 = vmatprep.subr.mxu0 %v149_v32  ;;  %297 = vmatprep.subr.mxu1 %v149_v32 }
  0x38   :  { %187 = vmatpush1.msra.mxu0 %v148_v33  ;;  %313 = vmatpush1.msra.mxu1 %v148_v33 }
  0x39   :  { %188 = vmatprep.subr.mxu0 %v147_v34  ;;  %298 = vmatprep.subr.mxu1 %v147_v34 }
  0x3a   :  { %189 = vmatpush1.msra.mxu0 %v146_v35  ;;  %314 = vmatpush1.msra.mxu1 %v146_v35 }
  0x3b   :  { %190 = vmatprep.subr.mxu0 %v145_v36  ;;  %299 = vmatprep.subr.mxu1 %v145_v36 }
  0x3c   :  { %191 = vmatpush1.msra.mxu0 %v144_v37  ;;  %315 = vmatpush1.msra.mxu1 %v144_v37 }
  0x3d   :  { %192 = vmatprep.subr.mxu0 %v143_v38  ;;  %300 = vmatprep.subr.mxu1 %v143_v38 }
  0x3e   :  { %193 = vmatpush1.msra.mxu0 %v142_v39  ;;  %316 = vmatpush1.msra.mxu1 %v142_v39 }
  0x3f   :  { %194 = vmatprep.subr.mxu0 %v141_v40  ;;  %301 = vmatprep.subr.mxu1 %v141_v40 }
  0x40   :  { %195 = vmatpush1.msra.mxu0 %v140_v41  ;;  %317 = vmatpush1.msra.mxu1 %v140_v41 }
  0x41   :  { %196 = vmatprep.subr.mxu0 %v139_v42  ;;  %302 = vmatprep.subr.mxu1 %v139_v42 }
  0x42   :  { %197 = vmatpush1.msra.mxu0 %v138_v43  ;;  %318 = vmatpush1.msra.mxu1 %v138_v43 }
  0x43   :  { %198 = vmatprep.subr.mxu0 %v137_v44  ;;  %303 = vmatprep.subr.mxu1 %v137_v44 }
  0x44   :  { %199 = vmatpush1.msra.mxu0 %v136_v45  ;;  %319 = vmatpush1.msra.mxu1 %v136_v45 }
  0x45   :  { %200 = vmatprep.subr.mxu0 %v135_v46  ;;  %304 = vmatprep.subr.mxu1 %v135_v46 }
  0x46   :  { %201 = vmatpush1.msra.mxu0 %v134_v47  ;;  %320 = vmatpush1.msra.mxu1 %v134_v47 }
  0x47   :  { %202 = vmatprep.subr.mxu0 %v133_v48  ;;  %305 = vmatprep.subr.mxu1 %v133_v48 }
  0x48   :  { %203 = vmatpush1.msra.mxu0 %v132_v49  ;;  %321 = vmatpush1.msra.mxu1 %v132_v49 }
  0x49   :  { %204 = vmatprep.subr.mxu0 %v131_v50  ;;  %306 = vmatprep.subr.mxu1 %v131_v50 }
  0x4a   :  { %205 = vmatpush1.msra.mxu0 %v130_v51  ;;  %322 = vmatpush1.msra.mxu1 %v130_v51 }
  0xb1   :  { %v65_v12 = vpop.xlane.xlu0 %64  ;;  %v67_v13 = vpop.xlane.xlu1 %66 }
  0xb2   :  { %v72_v14 = vmul.f32 0.0078125, %v65_v12  ;;  %v73_v15 = vmul.f32 0.0078125, %v67_v13 }
  0xb4   :  { %v477_v16 = vsub.f32 %v60_v0, %v72_v14  ;;  %v479_v17 = vsub.f32 %v61_v1, %v73_v15 }
  0xb5   :  { %v69_v18 = vpop.xlane.xlu0 %68  ;;  %v71_v19 = vpop.xlane.xlu1 %70 }
  0xb6   :  { %v74_v20 = vmul.f32 0.0078125, %v69_v18  ;;  %v80_v21 = vmul.f32 %v477_v16, %v477_v16  ;;  %v75_v22 = vmul.f32 0.0078125, %v71_v19  ;;  %v81_v25 = vmul.f32 %v479_v17, %v479_v17 }
  0xb8   :  { %v483_v23 = vsub.f32 %v62_v2, %v74_v20  ;;  %84 = vadd.xlane.f32.xlu0 %v80_v21  ;;  %v485_v24 = vsub.f32 %v63_v3, %v75_v22  ;;  %v289_v2 = vld [vmem:[%s510_s1] ss:$0 sm:$0xff]  ;;  %v164_v20 = vlaneseq }
  0xba   :  { %v82_v26 = vmul.f32 %v483_v23, %v483_v23  ;;  %v83_v27 = vmul.f32 %v485_v24, %v485_v24  ;;  %v165_v21 = vshrl.u32 %v164_v20, 7 }
  0xbc   :  { %86 = vadd.xlane.f32.xlu0 %v81_v25  ;;  %88 = vadd.xlane.f32.xlu1 %v82_v26  ;;  %v166_v22 = vsub.s32 0, %v165_v21 }
  0xc0   :  { %90 = vadd.xlane.f32.xlu1 %v83_v27 }
 0x141   :  { %v85_v53 = vpop.xlane.xlu0 %84 }
 0x142   :  { %v92_v54 = vmul.f32 0.0078125, %v85_v53 }
 0x144   :  { %v96_v55 = vadd.f32 1e-05, %v92_v54 }
 0x145   :  { %v89_v56 = vpop.xlane.xlu1 %88  ;;  %v87_v57 = vpop.xlane.xlu0 %86 }
 0x146   :  { %332 = vrsqrt.f32 %v96_v55  ;;  %v94_v58 = vmul.f32 0.0078125, %v89_v56  ;;  %v93_v59 = vmul.f32 0.0078125, %v87_v57 }
 0x148   :  { %v98_v60 = vadd.f32 1e-05, %v94_v58  ;;  %v97_v61 = vadd.f32 1e-05, %v93_v59 }
 0x149   :  { %v91_v62 = vpop.xlane.xlu1 %90 }
 0x14a   :  { %334 = vrsqrt.f32 %v98_v60  ;;  %v95_v63 = vmul.f32 0.0078125, %v91_v62 }
 0x14b   :  { %336 = vrsqrt.f32 %v97_v61 }
 0x14c   :  { %v99_v0 = vadd.f32 1e-05, %v95_v63 }
 0x14e   :  { %338 = vrsqrt.f32 %v99_v0 }
 0x153   :  { %v333_v1 = vpop.eup %332 }
 0x154   :  { %v104_v3 = vmul.f32 %v333_v1, %v477_v16 }
 0x156   :  { %v115_v5 = vmul.f32 %v289_v2, %v104_v3 }
 0x157   :  { %v335_v6 = vpop.eup %334 }
 0x158   :  { %v337_v7 = vpop.eup %336  ;;  %v126_v8 = vadd.f32 %v290_v4, %v115_v5  ;;  %v106_v9 = vmul.f32 %v335_v6, %v483_v23  ;;  %v170_v23 = vsub.s32 1, %v165_v21 }
 0x159   :  { %v105_v10 = vmul.f32 %v337_v7, %v479_v17  ;;  %v162_v17 = vld [vmem:[%s513_s4] sm:$0x3]  ;;  %s434_s4 = smov [#allocation8]  }
 0x15a   :  { %239 = vmatmul.mubr.f32.vlgmr.msra.gmra.mxu0 %v126_v8  ;;  %v117_v11 = vmul.f32 %v289_v2, %v106_v9  ;;  %v167_v25 = vrot.slane %v162_v17, %v166_v22  ;;  %v171_v26 = vrot.slane %v162_v17, %v170_v23  ;;  %s276_s13 = sshll.u32 %s434_s4, 4  ;;  %s277_s13 = int_to_ptr.vmem [resolvable:$true] %s276_s13 }
 0x15b   :  { %v339_v12 = vpop.eup %338  ;;  %244 = vmatprep.mubr.f32.mxu0 %v433_v52  ;;  %v116_v13 = vmul.f32 %v289_v2, %v105_v10  ;;  %s400_s14 = scalar_lea.vmem %s277_s13, 1024  ;;  %p405_p2 = scmp.lt.s32.totalorder %s277_s13, %s277_s13 }
 0x15c   :  { %v128_v14 = vadd.f32 %v290_v4, %v117_v11  ;;  %v107_v15 = vmul.f32 %v339_v12, %v485_v24  ;;  %p401_p1 = scmp.ne.s32.totalorder %s277_s13, %s400_s14  ;;  %p406_p3 = scmp.lt.s32.totalorder %s400_s14, %s400_s14 }
 0x15d   :  { %v127_v18 = vadd.f32 %v290_v4, %v116_v13 }
 0x15e   :  { %251 = vmatmul.mubr.f32.vlgmr.msra.gmra.mxu1 %v128_v14  ;;  %v118_v16 = vmul.f32 %v289_v2, %v107_v15  ;;  %p407_p4 = por %p406_p3, %p405_p2 }
 0x15f   :  { %245 = vmatmul.mubr.f32.gmra.mxu0 %v127_v18  ;;  %256 = vmatprep.mubr.f32.mxu1 %v433_v52 }
 0x160   :  { %v129_v19 = vadd.f32 %v290_v4, %v118_v16  ;;  %p408_p5 = pnand %p407_p4, %p401_p1 }
 0x162   :  { %257 = vmatmul.mubr.f32.gmra.mxu1 %v129_v19 }
 0x21a   :  { %v240_v27 = vpop.f32.mrf.mxu0 }
 0x21b   :  { %v241_v28 = vadd.f32 %v240_v27, %v167_v25 }
 0x21c   :  { %v242_v24 = vpop.f32.mrf.mxu0 }
 0x21d   :  { %263 = vst [vmem:[#allocation8] sm:$0xff] %v241_v28  ;;  %v243_v29 = vadd.f32 %v242_v24, %v171_v26 }
 0x21e   :  { %v252_v30 = vpop.f32.mrf.mxu1 }
 0x21f   :  { %264 = vst [vmem:[#allocation8 + $0x8] sm:$0xff] %v243_v29  ;;  %v246_v31 = vpop.f32.mrf.mxu0  ;;  %v253_v32 = vadd.f32 %v252_v30, %v167_v25 }
 0x220   :  { %v247_v33 = vadd.f32 %v246_v31, %v167_v25  ;;  %v254_v34 = vpop.f32.mrf.mxu1 }
 0x221   :  { %267 = vst [vmem:[#allocation8 + $0x20] sm:$0xff] %v253_v32  ;;  %v248_v35 = vpop.f32.mrf.mxu0  ;;  %v255_v36 = vadd.f32 %v254_v34, %v171_v26 }
 0x222   :  { %265 = vst [vmem:[#allocation8 + $0x10] sm:$0xff] %v247_v33  ;;  %v249_v37 = vadd.f32 %v248_v35, %v171_v26  ;;  %v258_v38 = vpop.f32.mrf.mxu1 }
 0x223   :  { %268 = vst [vmem:[#allocation8 + $0x28] sm:$0xff] %v255_v36  ;;  %v259_v39 = vadd.f32 %v258_v38, %v167_v25 }
 0x224   :  { %266 = vst [vmem:[#allocation8 + $0x18] sm:$0xff] %v249_v37  ;;  %v260_v40 = vpop.f32.mrf.mxu1 }
 0x225   :  { %269 = vst [vmem:[#allocation8 + $0x30] sm:$0xff] %v259_v39  ;;  %v261_v41 = vadd.f32 %v260_v40, %v171_v26 }
 0x227   :  { %270 = vst [vmem:[#allocation8 + $0x38] sm:$0xff] %v261_v41 }
 0x228   :  { %411 = shalt.err (!%p408_p5)
}
 0x229   :  { %282 = dma.vmem_to_hbm [thread:$0]  %s277_s13, 1024, %s514_s5, [#allocation4], %s431_s2, %s431_s2, %s432_s9  }
 0x22a   :  { %424 = dma.done.wait [#allocation4], 1024  }
 0x22b   :  { %425 = vsyncadd [#allocation4], 4294966272 }
 0x22c   :  { %286 = vsyncpa [#allocation3], 1 }
 0x22d   :  { %287 = vsyncpa [#allocation6], 1 }
 0x22e   :  { %288 = vsyncpa [#allocation4], 1 }

</bundles_post_ra>
